<compile_context>
chip_gen: v6e
topology: v6e:2x2x1
jax: 0.10.0
libtpu: 0.0.40
codegen_flags: <defaults>
</compile_context>

<pallas_src>
import functools

import jax
import jax.numpy as jnp
from jax.experimental import pallas as pl
from jax.experimental.pallas import tpu as pltpu


def resblock_kernel(x_ref,     # (1, H+2, (W+2)*Cin)       bf16  lane-dense padded image
                    w1_ref,    # (9*W*Cin, W*(Cmid+Cout))  bf16  conv1 ++ fused 1x1 skip (scale folded)
                    b1_ref,    # (1, W*(Cmid+Cout))        f32   per-pixel-tiled bias (conv1 || skip)
                    w2_ref,    # (9*W*Cmid, W*Cout)        bf16  conv2 (scale folded)
                    b2_ref,    # (1, W*Cout)               f32
                    out_ref,   # (1, H, W*Cout)            bf16  lane-dense output
                    skip_ref,  # (H, W*Cout)               f32   VMEM scratch for the residual
                    *, W, Cin, Cmid, Cout):
    H = out_ref.shape[1]
    x = x_ref[0]                                             # (H+2, (W+2)*Cin) bf16

    # ---- conv1 (+ fused 1x1 skip): lane-dense im2col -> one matmul ----------
    # kw taps = lane-axis slices by kw*Cin (3-way concat once); kh taps = free
    # leading-dim slices of that buffer (3-way concat).
    kwcat1 = jnp.concatenate(
        [x[:, kw * Cin: kw * Cin + W * Cin] for kw in range(3)], axis=-1)   # (H+2, 3*W*Cin)
    cols1 = jnp.concatenate(
        [kwcat1[kh: kh + H] for kh in range(3)], axis=-1)                   # (H, 9*W*Cin)
    y1 = jnp.dot(cols1, w1_ref[...],
                 preferred_element_type=jnp.float32) + b1_ref[...]          # (H, W*(Cmid+Cout)) f32

    mid = jnp.maximum(y1[:, : W * Cmid], 0.0).astype(jnp.bfloat16)          # BN+ReLU, (H, W*Cmid)
    skip_ref[...] = y1[:, W * Cmid:]                                        # BN only, (H, W*Cout) f32

    # ---- conv2: explicit zero padding (lanes = W, sublanes = H) -> one matmul
    zl = jnp.zeros((H, Cmid), jnp.bfloat16)
    zr = jnp.zeros((1, (W + 2) * Cmid), jnp.bfloat16)
    mid_p = jnp.concatenate(
        [zr, jnp.concatenate([zl, mid, zl], axis=-1), zr], axis=0)          # (H+2, (W+2)*Cmid)
    kwcat2 = jnp.concatenate(
        [mid_p[:, kw * Cmid: kw * Cmid + W * Cmid] for kw in range(3)], axis=-1)  # (H+2, 3*W*Cmid)
    cols2 = jnp.concatenate(
        [kwcat2[kh: kh + H] for kh in range(3)], axis=-1)                   # (H, 9*W*Cmid)
    y2 = jnp.dot(cols2, w2_ref[...],
                 preferred_element_type=jnp.float32) + b2_ref[...]          # (H, W*Cout) f32

    # ---- residual add + final ReLU, lane-dense bf16 store -------------------
    out_ref[0] = jnp.maximum(y2 + skip_ref[...], 0.0).astype(out_ref.dtype)


def fold_bn(gamma, beta, mean, var, eps=1e-5):
    scale = gamma / jnp.sqrt(var + eps)
    bias = beta - mean * scale
    return scale.astype(jnp.float32), bias.astype(jnp.float32)


def fold_scaled_weights(params):
    """Fold BN scale into the conv weights (then bf16); bias stays f32."""
    w1s = (params["w1"] * params["s1"]).astype(jnp.bfloat16)    # (3,3,Cin,Cmid)
    w2s = (params["w2"] * params["s2"]).astype(jnp.bfloat16)    # (3,3,Cmid,Cout)
    wsks = (params["wsk"] * params["ssk"]).astype(jnp.bfloat16)  # (Cin,Cout)
    return w1s, w2s, wsks


def resblock_pallas(x_nchw, params):
    """x_nchw: (N, Cin, H, W) f32 -> (N, Cout, H, W) f32.  stride=1 only."""
    N, Cin, H, W = x_nchw.shape
    Cmid = params["w1"].shape[-1]
    Cout = params["w2"].shape[-1]

    w1s, w2s, wsks = fold_scaled_weights(params)

    # NCHW -> lane-dense NHWC in bf16; pad H and W by 1 (conv halo) once.
    x = jnp.transpose(x_nchw, (0, 2, 3, 1)).astype(jnp.bfloat16)
    x = jnp.pad(x, ((0, 0), (1, 1), (1, 1), (0, 0)))
    x = x.reshape(N, H + 2, (W + 2) * Cin)                       # (N, H+2, (W+2)*Cin)

    # Per-pixel block-diagonal weight expansion: output columns are ordered
    # pixel-major (w*Co + co), so the matmul result is already lane-dense.
    eye = jnp.eye(W, dtype=jnp.bfloat16)

    def expand(wt):  # (3,3,Ci,Co) -> (9*W*Ci, W*Co), rows ordered (kh,kw,w,ci)
        Ci, Co = wt.shape[2], wt.shape[3]
        return jnp.einsum("wv,abco->abwcvo", eye, wt).reshape(9 * W * Ci, W * Co)

    w1_big = expand(w1s)                                          # (9*W*Cin, W*Cmid)
    # fused 1x1 skip: only the centre tap (kh=1, kw=1 -> p=4) contributes.
    skip_big = jnp.zeros((9 * W * Cin, W * Cout), jnp.bfloat16)
    centre = jnp.einsum("wv,co->wcvo", eye, wsks).reshape(W * Cin, W * Cout)
    skip_big = skip_big.at[4 * W * Cin: 5 * W * Cin].set(centre)
    w1full = jnp.concatenate([w1_big, skip_big], axis=1)          # (9*W*Cin, W*(Cmid+Cout))
    w2full = expand(w2s)                                          # (9*W*Cmid, W*Cout)

    b1full = jnp.concatenate(
        [jnp.tile(params["b1"], W), jnp.tile(params["bsk"], W)]
    ).reshape(1, W * (Cmid + Cout)).astype(jnp.float32)
    b2full = jnp.tile(params["b2"], W).reshape(1, W * Cout).astype(jnp.float32)

    const = lambda shape: pl.BlockSpec(shape, lambda n: (0,) * len(shape))

    out = pl.pallas_call(
        functools.partial(resblock_kernel, W=W, Cin=Cin, Cmid=Cmid, Cout=Cout),
        out_shape=jax.ShapeDtypeStruct((N, H, W * Cout), jnp.bfloat16),
        grid_spec=pltpu.PrefetchScalarGridSpec(
            num_scalar_prefetch=0,
            grid=(N,),
            in_specs=[
                pl.BlockSpec((1, H + 2, (W + 2) * Cin), lambda n: (n, 0, 0)),
                const((9 * W * Cin, W * (Cmid + Cout))),
                const((1, W * (Cmid + Cout))),
                const((9 * W * Cmid, W * Cout)),
                const((1, W * Cout)),
            ],
            out_specs=pl.BlockSpec((1, H, W * Cout), lambda n: (n, 0, 0)),
            scratch_shapes=[pltpu.VMEM((H, W * Cout), jnp.float32)],
        ),
        compiler_params=pltpu.CompilerParams(
            dimension_semantics=("parallel",),
            vmem_limit_bytes=32 * 1024 * 1024),
    )(x, w1full, b1full, w2full, b2full)

    # lane-dense (N, H, W*Cout) bf16 -> NCHW f32 to mirror the PyTorch module.
    out = out.reshape(N, H, W, Cout).astype(jnp.float32)
    return jnp.transpose(out, (0, 3, 1, 2))


def resblock_reference(x_nchw, params):
    """Pure-JAX reference with the same bf16 transport and scale-folded weights."""
    w1s, w2s, wsks = fold_scaled_weights(params)
    x = jnp.transpose(x_nchw, (0, 2, 3, 1)).astype(jnp.bfloat16)
    dn = ("NHWC", "HWIO", "NHWC")
    conv = lambda v, w, p: jax.lax.conv_general_dilated(
        v, w, (1, 1), ((p, p), (p, p)),
        dimension_numbers=dn, preferred_element_type=jnp.float32)
    y = conv(x, w1s, 1) + params["b1"]
    mid = jnp.maximum(y, 0.0).astype(jnp.bfloat16)       # kernel feeds conv2 in bf16
    y2 = conv(mid, w2s, 1) + params["b2"]
    skip = conv(x, wsks[None, None], 0) + params["bsk"]
    out = jnp.maximum(y2 + skip, 0.0)
    return jnp.transpose(out, (0, 3, 1, 2))


def make_params(key, in_channels, intermediate_channels):
    """Deterministic synthetic parameters (conv weights HWIO, folded BN)."""
    cmid = cout = intermediate_channels
    ks = jax.random.split(key, 3)
    w1 = 0.1 * jax.random.normal(ks[0], (3, 3, in_channels, cmid), jnp.float32)
    w2 = 0.1 * jax.random.normal(ks[1], (3, 3, cmid, cout), jnp.float32)
    wsk = 0.1 * jax.random.normal(ks[2], (in_channels, cout), jnp.float32)

    def bn(c, off):
        gamma = 1.0 + 0.05 * jnp.arange(c, dtype=jnp.float32)
        beta = 0.02 * (jnp.arange(c, dtype=jnp.float32) - off)
        mean = 0.01 * jnp.arange(c, dtype=jnp.float32)
        var = 1.0 + 0.1 * jnp.arange(c, dtype=jnp.float32)
        return fold_bn(gamma, beta, mean, var)

    s1, b1 = bn(cmid, 1.0)
    s2, b2 = bn(cout, 2.0)
    ssk, bsk = bn(cout, 3.0)
    return dict(w1=w1, s1=s1, b1=b1, w2=w2, s2=s2, b2=b2,
                wsk=wsk, ssk=ssk, bsk=bsk)


if __name__ == "__main__":
    key = jax.random.PRNGKey(0)
    k_x, k_p = jax.random.split(key)

    N, Cin, H, W = 2, 4, 16, 16          # input (NCHW) like the PyTorch module
    Cmid = 8                              # intermediate_channels (=> skip is 1x1 conv)

    x = jax.random.normal(k_x, (N, Cin, H, W), jnp.float32)
    params = make_params(k_p, Cin, Cmid)

    out = resblock_pallas(x, params)
    out = jax.block_until_ready(out)

    ref = resblock_reference(x, params)
    assert out.shape == (N, Cmid, H, W), out.shape
    max_err = jnp.max(jnp.abs(out - ref))
    assert jnp.allclose(out, ref, atol=1e-2, rtol=2e-2), f"max err {max_err}"

    print("KERNEL_OK")
</pallas_src>

<mosaic_0001>
module attributes {stable_mosaic.version = 11 : i64} {
  func.func @resblock_kernel(%arg0: i32, %arg1: memref<1x18x72xbf16, #tpu.memory_space<vmem>>, %arg2: memref<576x256xbf16, #tpu.memory_space<vmem>>, %arg3: memref<1x256xf32, #tpu.memory_space<vmem>>, %arg4: memref<1152x128xbf16, #tpu.memory_space<vmem>>, %arg5: memref<1x128xf32, #tpu.memory_space<vmem>>, %arg6: memref<1x16x128xbf16, #tpu.memory_space<vmem>>, %arg7: memref<16x128xf32, #tpu.memory_space<vmem>>) attributes {dimension_semantics = [#tpu.dimension_semantics<parallel>], iteration_bounds = array<i64: 2>, scalar_prefetch = 0 : i64, scratch_operands = 1 : i64, tpu.core_type = #tpu.core_type<tc>, window_params = [{transform_indices = @transform_0, window_bounds = array<i64: 1, 18, 72>}, {pipeline_mode = #tpu.pipeline_mode<synchronous>, transform_indices = @transform_1, window_bounds = array<i64: 576, 256>}, {pipeline_mode = #tpu.pipeline_mode<synchronous>, transform_indices = @transform_2, window_bounds = array<i64: 1, 256>}, {pipeline_mode = #tpu.pipeline_mode<synchronous>, transform_indices = @transform_3, window_bounds = array<i64: 1152, 128>}, {pipeline_mode = #tpu.pipeline_mode<synchronous>, transform_indices = @transform_4, window_bounds = array<i64: 1, 128>}, {transform_indices = @transform_5, window_bounds = array<i64: 1, 16, 128>}]} {
    %c0 = arith.constant 0 : index
    %c0_0 = arith.constant 0 : index
    %c0_1 = arith.constant 0 : index
    %0 = vector.load %arg1[%c0, %c0_0, %c0_1] : memref<1x18x72xbf16, #tpu.memory_space<vmem>>, vector<1x18x72xbf16>
    %1 = vector.shape_cast %0 : vector<1x18x72xbf16> to vector<18x72xbf16>
    %2 = vector.extract_strided_slice %1 {offsets = [0, 0], sizes = [18, 64], strides = [1, 1]} : vector<18x72xbf16> to vector<18x64xbf16>
    %3 = vector.extract_strided_slice %1 {offsets = [0, 4], sizes = [18, 64], strides = [1, 1]} : vector<18x72xbf16> to vector<18x64xbf16>
    %4 = vector.extract_strided_slice %1 {offsets = [0, 8], sizes = [18, 64], strides = [1, 1]} : vector<18x72xbf16> to vector<18x64xbf16>
    %5 = tpu.concatenate %2, %3, %4 in 1 : vector<18x64xbf16>, vector<18x64xbf16>, vector<18x64xbf16> -> vector<18x192xbf16>
    %6 = vector.extract_strided_slice %5 {offsets = [0, 0], sizes = [16, 192], strides = [1, 1]} : vector<18x192xbf16> to vector<16x192xbf16>
    %7 = vector.extract_strided_slice %5 {offsets = [1, 0], sizes = [16, 192], strides = [1, 1]} : vector<18x192xbf16> to vector<16x192xbf16>
    %8 = vector.extract_strided_slice %5 {offsets = [2, 0], sizes = [16, 192], strides = [1, 1]} : vector<18x192xbf16> to vector<16x192xbf16>
    %9 = tpu.concatenate %6, %7, %8 in 1 : vector<16x192xbf16>, vector<16x192xbf16>, vector<16x192xbf16> -> vector<16x576xbf16>
    %c0_2 = arith.constant 0 : index
    %c0_3 = arith.constant 0 : index
    %10 = vector.load %arg2[%c0_2, %c0_3] : memref<576x256xbf16, #tpu.memory_space<vmem>>, vector<576x256xbf16>
    %cst = arith.constant dense<0.000000e+00> : vector<16x256xf32>
    %11 = tpu.matmul %9, %10, %cst {dimension_numbers = #tpu.dot_dimension_numbers<[1], [0], [0], [1], [0, 0, 1, 1], [], []>} : vector<16x576xbf16>, vector<576x256xbf16>, vector<16x256xf32> -> vector<16x256xf32>
    %c0_4 = arith.constant 0 : index
    %c0_5 = arith.constant 0 : index
    %12 = vector.load %arg3[%c0_4, %c0_5] : memref<1x256xf32, #tpu.memory_space<vmem>>, vector<1x256xf32>
    %13 = vector.broadcast %12 : vector<1x256xf32> to vector<16x256xf32>
    %14 = arith.addf %11, %13 : vector<16x256xf32>
    %15 = vector.extract_strided_slice %14 {offsets = [0, 0], sizes = [16, 128], strides = [1, 1]} : vector<16x256xf32> to vector<16x128xf32>
    %cst_6 = arith.constant 0.000000e+00 : f32
    %16 = vector.broadcast %cst_6 : f32 to vector<16x128xf32>
    %17 = arith.maximumf %15, %16 : vector<16x128xf32>
    %18 = arith.truncf %17 : vector<16x128xf32> to vector<16x128xbf16>
    %19 = vector.extract_strided_slice %14 {offsets = [0, 128], sizes = [16, 128], strides = [1, 1]} : vector<16x256xf32> to vector<16x128xf32>
    %c0_7 = arith.constant 0 : index
    %c0_8 = arith.constant 0 : index
    %20 = vector.load %arg7[%c0_7, %c0_8] : memref<16x128xf32, #tpu.memory_space<vmem>>, vector<16x128xf32>
    tpu.vector_store %arg7[%c0_7, %c0_8], %19 {strides = array<i32>} : memref<16x128xf32, #tpu.memory_space<vmem>>, vector<16x128xf32>,
    %cst_9 = arith.constant 0.000000e+00 : bf16
    %21 = vector.broadcast %cst_9 : bf16 to vector<16x8xbf16>
    %cst_10 = arith.constant 0.000000e+00 : bf16
    %22 = vector.broadcast %cst_10 : bf16 to vector<1x144xbf16>
    %23 = tpu.concatenate %21, %18, %21 in 1 : vector<16x8xbf16>, vector<16x128xbf16>, vector<16x8xbf16> -> vector<16x144xbf16>
    %24 = tpu.concatenate %22, %23, %22 in 0 : vector<1x144xbf16>, vector<16x144xbf16>, vector<1x144xbf16> -> vector<18x144xbf16>
    %25 = vector.extract_strided_slice %24 {offsets = [0, 0], sizes = [18, 128], strides = [1, 1]} : vector<18x144xbf16> to vector<18x128xbf16>
    %26 = vector.extract_strided_slice %24 {offsets = [0, 8], sizes = [18, 128], strides = [1, 1]} : vector<18x144xbf16> to vector<18x128xbf16>
    %27 = vector.extract_strided_slice %24 {offsets = [0, 16], sizes = [18, 128], strides = [1, 1]} : vector<18x144xbf16> to vector<18x128xbf16>
    %28 = tpu.concatenate %25, %26, %27 in 1 : vector<18x128xbf16>, vector<18x128xbf16>, vector<18x128xbf16> -> vector<18x384xbf16>
    %29 = vector.extract_strided_slice %28 {offsets = [0, 0], sizes = [16, 384], strides = [1, 1]} : vector<18x384xbf16> to vector<16x384xbf16>
    %30 = vector.extract_strided_slice %28 {offsets = [1, 0], sizes = [16, 384], strides = [1, 1]} : vector<18x384xbf16> to vector<16x384xbf16>
    %31 = vector.extract_strided_slice %28 {offsets = [2, 0], sizes = [16, 384], strides = [1, 1]} : vector<18x384xbf16> to vector<16x384xbf16>
    %32 = tpu.concatenate %29, %30, %31 in 1 : vector<16x384xbf16>, vector<16x384xbf16>, vector<16x384xbf16> -> vector<16x1152xbf16>
    %c0_11 = arith.constant 0 : index
    %c0_12 = arith.constant 0 : index
    %33 = vector.load %arg4[%c0_11, %c0_12] : memref<1152x128xbf16, #tpu.memory_space<vmem>>, vector<1152x128xbf16>
    %cst_13 = arith.constant dense<0.000000e+00> : vector<16x128xf32>
    %34 = tpu.matmul %32, %33, %cst_13 {dimension_numbers = #tpu.dot_dimension_numbers<[1], [0], [0], [1], [0, 0, 1, 1], [], []>} : vector<16x1152xbf16>, vector<1152x128xbf16>, vector<16x128xf32> -> vector<16x128xf32>
    %c0_14 = arith.constant 0 : index
    %c0_15 = arith.constant 0 : index
    %35 = vector.load %arg5[%c0_14, %c0_15] : memref<1x128xf32, #tpu.memory_space<vmem>>, vector<1x128xf32>
    %36 = vector.broadcast %35 : vector<1x128xf32> to vector<16x128xf32>
    %37 = arith.addf %34, %36 : vector<16x128xf32>
    %c0_16 = arith.constant 0 : index
    %c0_17 = arith.constant 0 : index
    %38 = vector.load %arg7[%c0_16, %c0_17] : memref<16x128xf32, #tpu.memory_space<vmem>>, vector<16x128xf32>
    %39 = arith.addf %37, %38 : vector<16x128xf32>
    %cst_18 = arith.constant 0.000000e+00 : f32
    %40 = vector.broadcast %cst_18 : f32 to vector<16x128xf32>
    %41 = arith.maximumf %39, %40 : vector<16x128xf32>
    %42 = arith.truncf %41 : vector<16x128xf32> to vector<16x128xbf16>
    %c0_19 = arith.constant 0 : index
    %c0_20 = arith.constant 0 : index
    %c0_21 = arith.constant 0 : index
    %43 = vector.load %arg6[%c0_19, %c0_20, %c0_21] : memref<1x16x128xbf16, #tpu.memory_space<vmem>>, vector<1x16x128xbf16>
    %44 = vector.shape_cast %43 : vector<1x16x128xbf16> to vector<16x128xbf16>
    %45 = vector.shape_cast %42 : vector<16x128xbf16> to vector<1x16x128xbf16>
    tpu.vector_store %arg6[%c0_19, %c0_20, %c0_21], %45 {strides = array<i32>} : memref<1x16x128xbf16, #tpu.memory_space<vmem>>, vector<1x16x128xbf16>,
    return
  }
  func.func @transform_0(%arg0: i32) -> (i32, i32, i32) {
    %c0_i32 = arith.constant 0 : i32
    %c0_i32_0 = arith.constant 0 : i32
    %c0_i32_1 = arith.constant 0 : i32
    return %arg0, %c0_i32, %c0_i32_0 : i32, i32, i32
  }
  func.func @transform_1(%arg0: i32) -> (i32, i32) {
    %c0_i32 = arith.constant 0 : i32
    %c0_i32_0 = arith.constant 0 : i32
    %c0_i32_1 = arith.constant 0 : i32
    return %c0_i32, %c0_i32_0 : i32, i32
  }
  func.func @transform_2(%arg0: i32) -> (i32, i32) {
    %c0_i32 = arith.constant 0 : i32
    %c0_i32_0 = arith.constant 0 : i32
    %c0_i32_1 = arith.constant 0 : i32
    return %c0_i32, %c0_i32_0 : i32, i32
  }
  func.func @transform_3(%arg0: i32) -> (i32, i32) {
    %c0_i32 = arith.constant 0 : i32
    %c0_i32_0 = arith.constant 0 : i32
    %c0_i32_1 = arith.constant 0 : i32
    return %c0_i32, %c0_i32_0 : i32, i32
  }
  func.func @transform_4(%arg0: i32) -> (i32, i32) {
    %c0_i32 = arith.constant 0 : i32
    %c0_i32_0 = arith.constant 0 : i32
    %c0_i32_1 = arith.constant 0 : i32
    return %c0_i32, %c0_i32_0 : i32, i32
  }
  func.func @transform_5(%arg0: i32) -> (i32, i32, i32) {
    %c0_i32 = arith.constant 0 : i32
    %c0_i32_0 = arith.constant 0 : i32
    %c0_i32_1 = arith.constant 0 : i32
    return %arg0, %c0_i32, %c0_i32_0 : i32, i32, i32
  }
}

</mosaic_0001>

<bundles_post_ra>
// kernel: tpu_custom_call.1
= control target key start
LH: loop header
LB: loop body
LE: loop exit
PB: predicated region body
PF: predicated region fallthrough
CT: control target
= control target key end

     0   :  { %10 = vsyncpa [#allocation4], 0  ;;  %s2865_s0 = inlined_call_operand.vmem [shape: bf16[2,18,72], index: 0, kind: input, shape index: {}]   ;;  %s2866_s1 = inlined_call_operand.hbm [shape: bf16[576,256], index: 1, kind: input, shape index: {}]   ;;  %s2867_s2 = inlined_call_operand.vmem [shape: f32[1,256], index: 2, kind: input, shape index: {}]   ;;  %s2868_s3 = inlined_call_operand.hbm [shape: bf16[1152,128], index: 3, kind: input, shape index: {}]   ;;  %s2869_s4 = inlined_call_operand.vmem [shape: f32[1,128], index: 4, kind: input, shape index: {}]   ;;  %s2870_s5 = inlined_call_operand.hbm [shape: bf16[2,16,128], index: 5, kind: output, shape index: {}]  }
   0x1   :  { %11 = vsyncpa [#allocation7], 0 }
   0x2   :  { %12 = vsyncpa [#allocation5], 0 }
   0x3   :  { %14 = vsyncpa [#allocation5 + $0x1], 0  ;;  %s2631_s18 = smov 0   ;;  %s2633_s19 = smov 0  }
   0x4   :  { %s2635_s20 = smov 0   ;;  %s2637_s21 = smov 0  }
   0x5 LB: > { %s2652_s22 = sadd.s32 4294967295, %s2583_s21   ;;  %s1917_s23 = sadd.s32 4294967294, %s2583_s21   ;;  %s2583_s21 = sphi %s2637_s21, %s2886_s21   ;;  %s2579_s20 = sphi %s2635_s20, %s2885_s20   ;;  %s2575_s19 = sphi %s2633_s19, %s2884_s19   ;;  %s2571_s18 = sphi %s2631_s18, %s2883_s18  }
   0x6   : > { %s2656_s24 = sadd.s32 1, %s2583_s21   ;;  %s137_s25 = sadd.s32 1, %s2579_s20 }
   0x7   : > { %s134_s26 = ssub.s32 %s2583_s21, %s2656_s24  ;;  %p147_p0 = scmp.ne.s32.totalorder %s2579_s20, %s2575_s19 }
   0x8   : > { %p135_p1 = scmp.eq.s32.totalorder %s134_s26, 0  ;;  %p148_p2 = scmp.eq.s32.totalorder %s2652_s22, 1 }
   0x9   : > { %p153_p3 = scmp.ne.s32.totalorder %s2575_s19, %s2571_s18  ;;  %p154_p4 = scmp.eq.s32.totalorder %s1917_s23, 1 }
   0xa   : > { %s2667_s27 = scalar_select %p135_p1, %s2579_s20, %s137_s25  }
   0xb   : > { %p2669_p5 = por %p148_p2, %p147_p0  ;;  %p2673_p6 = por %p154_p4, %p153_p3 }
   0xc   : > { %p1918_p7 = scmp.ge.s32.totalorder %s2583_s21, 1  ;;  %p161_p8 = scmp.lt.s32.totalorder %s2583_s21, 3 }
   0xd   : > { %s2873_s29 = scalar_select %p2673_p6, 1, 0 }
   0xe   : > { %p2871_p9 = scmp.eq.s32.totalorder %s2652_s22, 0  ;;  %p2680_p10 = pnand %p1918_p7, %p161_p8 }
   0xf   : > { %s2585_s6 = smov [#allocation3]   ;;  %s2586_s9 = smov [#allocation6]  }
  0x10   : > { %s173_s7 = sshll.u32 %s2585_s6, 4  ;;  %p2218_p11 = pneg %p2680_p10  ;;  %s174_s7 = int_to_ptr.vmem [resolvable:$true] %s173_s7 }
  0x11   : > { %s189_s10 = sshll.u32 %s2586_s9, 4  ;;  %s2474_s11 = scalar_lea.vmem %s174_s7, 9216  ;;  %s190_s10 = int_to_ptr.vmem [resolvable:$true] %s189_s10 }
  0x12   : > { %p2688_p12 = pnand %p2871_p9, %p2218_p11  ;;  %p2475_p0 = scmp.ne.s32.totalorder %s174_s7, %s2474_s11 }
  0x13   : > { %p2482_p3 = scmp.lt.s32.totalorder %s174_s7, %s174_s7  ;;  %p2483_p4 = scmp.lt.s32.totalorder %s2474_s11, %s2474_s11 }
  0x14   : > { %p2465_p13 = pneg %p2688_p12 }
  0x15   : > { %p2484_p7 = por %p2483_p4, %p2482_p3 }
  0x16   : > { %p2477_p1 = pnand %p2475_p0, %p2465_p13 }
  0x18   : > { %p2478_p2 = pneg %p2477_p1 }
  0x1a   : > { %p2485_p8 = pnand %p2484_p7, %p2478_p2 }
  0x1c   : > { %2488 = shalt.err (!%p2485_p8)
}
  0x1d   : > { %s2587_s12 = smov 128   ;;  %s2588_s13 = smov 8  }
  0x1e   : > { %2221 = dma.hbm_to_vmem [thread:$0]  (!%p2688_p12), %s2866_s1, 9216, %s174_s7, [#allocation4], %s2587_s12, %s2587_s12, %s2588_s13  }
  0x1f   : > { %s2500_s16 = scalar_lea.vmem %s190_s10, 9216  ;;  %p2508_p9 = scmp.lt.s32.totalorder %s190_s10, %s190_s10 }
  0x20   : > { %p2501_p11 = scmp.ne.s32.totalorder %s190_s10, %s2500_s16  ;;  %p2509_p6 = scmp.lt.s32.totalorder %s2500_s16, %s2500_s16 }
  0x22   : > { %p2503_p0 = pnand %p2501_p11, %p2465_p13  ;;  %p2510_p3 = por %p2509_p6, %p2508_p9 }
  0x24   : > { %p2504_p1 = pneg %p2503_p0 }
  0x26   : > { %p2511_p2 = pnand %p2510_p3, %p2504_p1 }
  0x28   : > { %2514 = shalt.err (!%p2511_p2)
}
  0x29   : > { %s2589_s17 = smov 64   ;;  %s2590_s23 = smov 4  }
  0x2a   : > { %2224 = dma.hbm_to_vmem [thread:$0]  (!%p2688_p12), %s2868_s3, 9216, %s190_s10, [#allocation7], %s2589_s17, %s2589_s17, %s2590_s23  }
  0x2b   : > { %216 = sbr.rel (%p2680_p10) target bundleno = 1044 (0x414), region = 40  ;;  %p2876_p4 = scmp.eq.s32.totalorder (!%p2680_p10), %s2652_s22, 0 }
  0x30   : > { %2558 = dma.done.wait (%p2876_p4), [#allocation4], 9216   ;;  %p2877_p13 = pmov %p2876_p4 }
  0x31   : > { %p2878_p6 = pmov %p2876_p4 }
  0x32   : > { %2560 = vsyncadd (%p2877_p13), [#allocation4], 4294958080 }
  0x33   : > { %2562 = dma.done.wait (%p2878_p6), [#allocation7], 9216   ;;  %p2879_p9 = pmov %p2876_p4 }
  0x34   : > { %p248_p7 = scmp.lt.s32.totalorder %s2652_s22, 1  ;;  %s2591_s10 = smov 60   ;;  %v2283_v2 = vld [vmem:[#allocation3 + $0x74] ss:$8 sps:$4 sm:$0xff]   ;;  %v2287_v4 = vld [vmem:[#allocation3 + $0x70] ss:$8 sps:$4 sm:$0xff]  }
  0x35   : > { %2564 = vsyncadd (%p2879_p9), [#allocation7], 4294958080  ;;  %s2592_s11 = smov 120   ;;  %v2285_v3 = vld [vmem:[#allocation3 + $0x174] ss:$8 sps:$4 sm:$0xff]   ;;  %771 = vmatprep.subr.bf16.mxu0 %v2283_v2  ;;  %vm273_vm0 = vcmask 523264  }
  0x36   : > { %s249_s6 = scalar_select %p248_p7, %s2652_s22, 1  ;;  %v2288_v5 = vld [vmem:[#allocation3 + $0x170] ss:$8 sps:$4 sm:$0xff]   ;;  %814 = vmatprep.subr.bf16.mxu1 %v2285_v3  ;;  %772 = vmatpush1.bf16.msra.mxu0 %v2287_v4  ;;  %v2289_v6 = vld [vmem:[#allocation3 + $0x64] ss:$8 sps:$4 sm:$0xff]   ;;  %vm313_vm1 = vcmask 1046528  }
  0x37   : > { %v2291_v7 = vld [vmem:[#allocation3 + $0x164] ss:$8 sps:$4 sm:$0xff]   ;;  %v2293_v8 = vld [vmem:[#allocation3 + $0x60] ss:$8 sps:$4 sm:$0xff]   ;;  %815 = vmatpush1.bf16.msra.mxu1 %v2288_v5  ;;  %773 = vmatprep.subr.bf16.mxu0 %v2289_v6  ;;  %v2295_v10 = vld [vmem:[#allocation3 + $0x54] ss:$8 sps:$4 sm:$0xff]  }
  0x38   : > { %s2207_s7 = smul.u32 12, %s249_s6  ;;  %v2294_v9 = vld [vmem:[#allocation3 + $0x160] ss:$8 sps:$4 sm:$0xff]   ;;  %816 = vmatprep.subr.bf16.mxu1 %v2291_v7  ;;  %v2297_v11 = vld [vmem:[#allocation3 + $0x154] ss:$8 sps:$4 sm:$0xff]   ;;  %s2593_s12 = smov 64  }
  0x39   : > { %v2299_v12 = vld [vmem:[#allocation3 + $0x50] ss:$8 sps:$4 sm:$0xff]   ;;  %v2301_v13 = vld [vmem:[#allocation3 + $0x44] ss:$8 sps:$4 sm:$0xff]   ;;  %v2305_v16 = vld [vmem:[#allocation3 + $0x40] ss:$8 sps:$4 sm:$0xff]  }
  0x3a   : > { %s252_s9 = scalar_lea.vmem %s2865_s0, %s2207_s7  ;;  %774 = vmatpush1.bf16.msra.mxu0 %v2293_v8  ;;  %v2300_v14 = vld [vmem:[#allocation3 + $0x150] ss:$8 sps:$4 sm:$0xff]   ;;  %v2303_v15 = vld [vmem:[#allocation3 + $0x144] ss:$8 sps:$4 sm:$0xff]   ;;  %v2307_v17 = vld [vmem:[#allocation3 + $0x34] ss:$8 sps:$4 sm:$0xff]  }
  0x3b   : > { %v2725_v0 = vld [vmem:[%s252_s9] sm:$0xff]   ;;  %v2727_v1 = vld [vmem:[%s252_s9 + $0x8] ss:$0 sps:$4 sm:$0x11]   ;;  %775 = vmatprep.subr.bf16.mxu0 %v2295_v10  ;;  %817 = vmatpush1.bf16.msra.mxu1 %v2294_v9  ;;  %v2309_v19 = vld [vmem:[#allocation3 + $0x134] ss:$8 sps:$4 sm:$0xff]  }
  0x3c   : > { %265 = vrot.lane.b32.xlu0 %v2725_v0, %s2591_s10  ;;  %269 = vrot.lane.b32.xlu1 %v2725_v0, %s2592_s11  ;;  %v2306_v18 = vld [vmem:[#allocation3 + $0x140] ss:$8 sps:$4 sm:$0xff]   ;;  %v2311_v20 = vld [vmem:[#allocation3 + $0x30] ss:$8 sps:$4 sm:$0xff]   ;;  %v2313_v21 = vld [vmem:[#allocation3 + $0x24] ss:$8 sps:$4 sm:$0xff]  }
  0x3d   : > { %818 = vmatprep.subr.bf16.mxu1 %v2297_v11  ;;  %v2312_v22 = vld [vmem:[#allocation3 + $0x130] ss:$8 sps:$4 sm:$0xff]   ;;  %v2315_v23 = vld [vmem:[#allocation3 + $0x124] ss:$8 sps:$4 sm:$0xff]   ;;  %v2317_v24 = vld [vmem:[#allocation3 + $0x20] ss:$8 sps:$4 sm:$0xff]  }
  0x3e   : > { %776 = vmatpush1.bf16.msra.mxu0 %v2299_v12  ;;  %v2319_v25 = vld [vmem:[#allocation3 + $0x14] ss:$8 sps:$4 sm:$0xff]   ;;  %v2318_v26 = vld [vmem:[#allocation3 + $0x120] ss:$8 sps:$4 sm:$0xff]   ;;  %v2323_v28 = vld [vmem:[#allocation3 + $0x10] ss:$8 sps:$4 sm:$0xff]  }
  0x3f   : > { %777 = vmatprep.subr.bf16.mxu0 %v2301_v13  ;;  %819 = vmatpush1.bf16.msra.mxu1 %v2300_v14  ;;  %v2321_v27 = vld [vmem:[#allocation3 + $0x114] ss:$8 sps:$4 sm:$0xff]   ;;  %v2325_v29 = vld [vmem:[#allocation3 + $0x4] ss:$8 sps:$4 sm:$0xff]   ;;  %v2324_v30 = vld [vmem:[#allocation3 + $0x110] ss:$8 sps:$4 sm:$0xff]  }
  0x40   : > { %267 = vrot.lane.b32.xlu0 %v2727_v1, %s2591_s10  ;;  %271 = vrot.lane.b32.xlu1 %v2727_v1, %s2592_s11  ;;  %v2327_v31 = vld [vmem:[#allocation3 + $0x104] ss:$8 sps:$4 sm:$0xff]   ;;  %v2329_v32 = vld [vmem:[#allocation3] ss:$8 sps:$4 sm:$0xff]   ;;  %v2331_v33 = vld [vmem:[#allocation3 + $0xf4] ss:$8 sps:$4 sm:$0xff]  }
  0x41   : > { %820 = vmatprep.subr.bf16.mxu1 %v2303_v15  ;;  %v2330_v34 = vld [vmem:[#allocation3 + $0x100] ss:$8 sps:$4 sm:$0xff]   ;;  %v2333_v35 = vld [vmem:[#allocation3 + $0x1f4] ss:$8 sps:$4 sm:$0xff]   ;;  %v2335_v36 = vld [vmem:[#allocation3 + $0xf0] ss:$8 sps:$4 sm:$0xff]  }
  0x42   : > { %778 = vmatpush1.bf16.msra.mxu0 %v2305_v16  ;;  %v2337_v37 = vld [vmem:[#allocation3 + $0xe4] ss:$8 sps:$4 sm:$0xff]   ;;  %v2336_v38 = vld [vmem:[#allocation3 + $0x1f0] ss:$8 sps:$4 sm:$0xff]   ;;  %v2341_v40 = vld [vmem:[#allocation3 + $0xe0] ss:$8 sps:$4 sm:$0xff]  }
  0x43   : > { %779 = vmatprep.subr.bf16.mxu0 %v2307_v17  ;;  %821 = vmatpush1.bf16.msra.mxu1 %v2306_v18  ;;  %v2339_v39 = vld [vmem:[#allocation3 + $0x1e4] ss:$8 sps:$4 sm:$0xff]   ;;  %v2343_v41 = vld [vmem:[#allocation3 + $0xd4] ss:$8 sps:$4 sm:$0xff]   ;;  %v2342_v42 = vld [vmem:[#allocation3 + $0x1e0] ss:$8 sps:$4 sm:$0xff]  }
  0x44   : > { %822 = vmatprep.subr.bf16.mxu1 %v2309_v19  ;;  %v2345_v43 = vld [vmem:[#allocation3 + $0x1d4] ss:$8 sps:$4 sm:$0xff]   ;;  %v2347_v44 = vld [vmem:[#allocation3 + $0xd0] ss:$8 sps:$4 sm:$0xff]   ;;  %v2349_v46 = vld [vmem:[#allocation3 + $0xc4] ss:$8 sps:$4 sm:$0xff]  }
  0x45   : > { %v2348_v45 = vld [vmem:[#allocation3 + $0x1d0] ss:$8 sps:$4 sm:$0xff]   ;;  %v2351_v47 = vld [vmem:[#allocation3 + $0x1c4] ss:$8 sps:$4 sm:$0xff]   ;;  %v2353_v48 = vld [vmem:[#allocation3 + $0xc0] ss:$8 sps:$4 sm:$0xff]  }
  0x46   : > { %780 = vmatpush1.bf16.msra.mxu0 %v2311_v20  ;;  %v2355_v49 = vld [vmem:[#allocation3 + $0xb4] ss:$8 sps:$4 sm:$0xff]   ;;  %v2354_v50 = vld [vmem:[#allocation3 + $0x1c0] ss:$8 sps:$4 sm:$0xff]   ;;  %v2359_v52 = vld [vmem:[#allocation3 + $0xb0] ss:$8 sps:$4 sm:$0xff]  }
  0x47   : > { %781 = vmatprep.subr.bf16.mxu0 %v2313_v21  ;;  %823 = vmatpush1.bf16.msra.mxu1 %v2312_v22  ;;  %v2357_v51 = vld [vmem:[#allocation3 + $0x1b4] ss:$8 sps:$4 sm:$0xff]   ;;  %v2361_v53 = vld [vmem:[#allocation3 + $0xa4] ss:$8 sps:$4 sm:$0xff]   ;;  %v2360_v54 = vld [vmem:[#allocation3 + $0x1b0] ss:$8 sps:$4 sm:$0xff]  }
  0x48   : > { %824 = vmatprep.subr.bf16.mxu1 %v2315_v23  ;;  %v2363_v55 = vld [vmem:[#allocation3 + $0x1a4] ss:$8 sps:$4 sm:$0xff]   ;;  %v2365_v56 = vld [vmem:[#allocation3 + $0xa0] ss:$8 sps:$4 sm:$0xff]   ;;  %v2367_v57 = vld [vmem:[#allocation3 + $0x94] ss:$8 sps:$4 sm:$0xff]  }
  0x49   : > { %v2366_v58 = vld [vmem:[#allocation3 + $0x1a0] ss:$8 sps:$4 sm:$0xff]   ;;  %v2369_v59 = vld [vmem:[#allocation3 + $0x194] ss:$8 sps:$4 sm:$0xff]   ;;  %v2371_v60 = vld [vmem:[#allocation3 + $0x90] ss:$8 sps:$4 sm:$0xff]  }
  0x4a   : > { %782 = vmatpush1.bf16.msra.mxu0 %v2317_v24  ;;  %v2373_v61 = vld [vmem:[#allocation3 + $0x84] ss:$8 sps:$4 sm:$0xff]   ;;  %v2372_v62 = vld [vmem:[#allocation3 + $0x190] ss:$8 sps:$4 sm:$0xff]   ;;  %v2377_v2 = vld [vmem:[#allocation3 + $0x80] ss:$8 sps:$4 sm:$0xff]  }
  0x4b   : > { %783 = vmatprep.subr.bf16.mxu0 %v2319_v25  ;;  %825 = vmatpush1.bf16.msra.mxu1 %v2318_v26  ;;  %v2375_v63 = vld [vmem:[#allocation3 + $0x184] ss:$8 sps:$4 sm:$0xff]   ;;  %v2378_v3 = vld [vmem:[#allocation3 + $0x180] ss:$8 sps:$4 sm:$0xff]   ;;  %v2381_v4 = vld [vmem:[#allocation3 + $0x234] ss:$8 sps:$4 sm:$0xff]  }
  0x4c   : > { %826 = vmatprep.subr.bf16.mxu1 %v2321_v27  ;;  %vm281_vm2 = vsmask.f32 7424  ;;  %s2595_s15 = smov 8   ;;  %vm908_vm3 = vcmask 64512   ;;  %vm929_vm4 = vcmask 1040384   ;;  %s2596_s16 = smov 112  }
  0x4d   : > { %vm930_vm5 = vsmask.f32 256  ;;  %vm948_vm7 = vcmask 982016   ;;  %vm960_vm8 = vcmask 916480   ;;  %vm2598_vm9 = vmmov 0   ;;  %s245_s25 = sand.u32 1, %s2575_s19  }
  0x4e   : > { %784 = vmatpush1.bf16.msra.mxu0 %v2323_v28  ;;  %v2379_v28 = vld [vmem:[#allocation3 + $0x230] ss:$8 sps:$4 sm:$0xff]   ;;  %vm2755_vm6 = vmand %vm929_vm4, %vm930_vm5  ;;  %s1925_s26 = sshll.u32 %s245_s25, 3  ;;  %s2084_s6 = sshll.u32 %s2652_s22, 7 }
  0x4f   : > { %785 = vmatprep.subr.bf16.mxu0 %v2325_v29  ;;  %827 = vmatpush1.bf16.msra.mxu1 %v2324_v30  ;;  %s247_s7 = scalar_lea.vmem [#allocation8], %s1925_s26  ;;  %s2819_s10 = scalar_lea.hbm %s2870_s5, %s2084_s6 }
  0x50   : > { %828 = vmatprep.subr.bf16.mxu1 %v2327_v31  ;;  %v2384_v31 = vld [vmem:[#allocation3 + $0x224] ss:$8 sps:$4 sm:$0xff]   ;;  %s1833_s8 = sshll.u32 %s247_s7, 4  ;;  %s2599_s22 = smov [#allocation8]   ;;  %s2821_s8 = int_to_ptr.vmem [resolvable:$true] %s1833_s8 }
  0x51   : > { %s2515_s13 = scalar_lea.vmem %s2821_s8, 128  ;;  %s2519_s14 = sshll.u32 %s2599_s22, 4  ;;  %s2520_s14 = int_to_ptr.vmem [resolvable:$false] %s2519_s14 }
  0x52   : > { %786 = vmatpush1.bf16.msra.mxu0 %v2329_v32  ;;  %v2382_v32 = vld [vmem:[#allocation3 + $0x220] ss:$8 sps:$4 sm:$0xff]   ;;  %p2516_p10 = scmp.ne.s32.totalorder %s2821_s8, %s2515_s13  ;;  %p2522_p11 = scmp.lt.s32.totalorder %s2821_s8, %s2520_s14 }
  0x53   : > { %787 = vmatprep.subr.bf16.mxu0 %v2331_v33  ;;  %829 = vmatpush1.bf16.msra.mxu1 %v2330_v34  ;;  %v2594_v33 = vmov 0   ;;  %v2387_v34 = vld [vmem:[#allocation3 + $0x214] ss:$8 sps:$4 sm:$0xff]  }
  0x54   : > { %830 = vmatprep.subr.bf16.mxu1 %v2333_v35  ;;  %v2385_v35 = vld [vmem:[#allocation3 + $0x210] ss:$8 sps:$4 sm:$0xff]   ;;  %p2517_p12 = pnand %p2516_p10, %p2669_p5 }
  0x56   : > { %788 = vmatpush2.bf16.msra.mxu0 %v2335_v36  ;;  %v2390_v36 = vld [vmem:[#allocation3 + $0x204] ss:$8 sps:$4 sm:$0xff]   ;;  %p2518_p8 = pneg %p2517_p12 }
  0x57   : > { %789 = vmatprep.subr.bf16.mxu0 %v2337_v37  ;;  %831 = vmatpush2.bf16.msra.mxu1 %v2336_v38  ;;  %v2388_v37 = vld [vmem:[#allocation3 + $0x200] ss:$8 sps:$4 sm:$0xff]  }
  0x58   : > { %832 = vmatprep.subr.bf16.mxu1 %v2339_v39 }
  0x5a   : > { %790 = vmatpush2.bf16.msra.mxu0 %v2341_v40 }
  0x5b   : > { %791 = vmatprep.subr.bf16.mxu0 %v2343_v41  ;;  %833 = vmatpush2.bf16.msra.mxu1 %v2342_v42  ;;  %v398_v41 = vlaneseq }
  0x5c   : > { %834 = vmatprep.subr.bf16.mxu1 %v2345_v43 }
  0x5d   : > { %v399_v42 = vshrl.u32 %v398_v41, 7 }
  0x5e   : > { %792 = vmatpush2.bf16.msra.mxu0 %v2347_v44  ;;  %v396_v44 = vld [vmem:[%s2867_s2] sm:$0x3] }
  0x5f   : > { %793 = vmatprep.subr.bf16.mxu0 %v2349_v46  ;;  %835 = vmatpush2.bf16.msra.mxu1 %v2348_v45  ;;  %v404_v43 = vsub.s32 1, %v399_v42 }
  0x60   : > { %836 = vmatprep.subr.bf16.mxu1 %v2351_v47 }
  0x61   : > { %v405_v45 = vrot.slane %v396_v44, %v404_v43 }
  0x62   : > { %794 = vmatpush2.bf16.msra.mxu0 %v2353_v48 }
  0x63   : > { %795 = vmatprep.subr.bf16.mxu0 %v2355_v49  ;;  %837 = vmatpush2.bf16.msra.mxu1 %v2354_v50 }
  0x64   : > { %838 = vmatprep.subr.bf16.mxu1 %v2357_v51 }
  0x66   : > { %796 = vmatpush2.bf16.msra.mxu0 %v2359_v52  ;;  %v400_v52 = vsub.s32 0, %v399_v42 }
  0x67   : > { %797 = vmatprep.subr.bf16.mxu0 %v2361_v53  ;;  %839 = vmatpush2.bf16.msra.mxu1 %v2360_v54 }
  0x68   : > { %840 = vmatprep.subr.bf16.mxu1 %v2363_v55 }
  0x6a   : > { %798 = vmatpush2.bf16.msra.mxu0 %v2365_v56  ;;  %v401_v56 = vrot.slane %v396_v44, %v400_v52 }
  0x6b   : > { %799 = vmatprep.subr.bf16.mxu0 %v2367_v57  ;;  %841 = vmatpush2.bf16.msra.mxu1 %v2366_v58 }
  0x6c   : > { %842 = vmatprep.subr.bf16.mxu1 %v2369_v59 }
  0x6e   : > { %800 = vmatpush2.bf16.msra.mxu0 %v2371_v60 }
  0x6f   : > { %801 = vmatprep.subr.bf16.mxu0 %v2373_v61  ;;  %843 = vmatpush2.bf16.msra.mxu1 %v2372_v62 }
  0x70   : > { %844 = vmatprep.subr.bf16.mxu1 %v2375_v63 }
  0x72   : > { %802 = vmatpush2.bf16.msra.mxu0 %v2377_v2 }
  0x73   : > { %845 = vmatpush2.bf16.msra.mxu1 %v2378_v3  ;;  %865 = vmatprep.subr.bf16.mxu0 %v2381_v4 }
  0xae   : > { %v266_v5 = vpop.permute.xlu0 %265  ;;  %v270_v6 = vpop.permute.xlu1 %269 }
  0xaf   : > { %v276_v7 = vsel %vm273_vm0, %v2725_v0, %v266_v5  ;;  %v293_v8 = vshrl.u32 %v270_v6, 16  ;;  %v295_v9 = vshll.u32 %v270_v6, 16  ;;  %v317_v38 = vrot.slane %v270_v6, 1 }
  0xb0   : > { %v284_v10 = vshll.u32 %v276_v7, 16  ;;  %v282_v18 = vshrl.u32 %v276_v7, 16  ;;  %v314_v21 = vrot.slane %v276_v7, 1 }
  0xb1   : > { %v297_v11 = vrot.slane %v295_v9, 1  ;;  %v2391_v9 = vld [vmem:[#allocation6 + $0x78] sm:$0xff]  }
  0xb2   : > { %v286_v12 = vrot.slane %v284_v10, 1  ;;  %v268_v13 = vpop.permute.xlu0 %267  ;;  %v272_v14 = vpop.permute.xlu1 %271  ;;  %v2392_v10 = vld [vmem:[#allocation6 + $0x38] sm:$0xff]   ;;  %2090 = vmatprep.subr.bf16.mxu1 %v2391_v9 }
  0xb3   : > { %v280_v15 = vsel %vm273_vm0, %v2727_v1, %v268_v13  ;;  %v300_v16 = vshll.u32 %v272_v14, 16  ;;  %v298_v17 = vor.u32 %v297_v11, %v293_v8  ;;  %v318_v39 = vrot.slane %v272_v14, 1  ;;  %v2393_v11 = vld [vmem:[#allocation6 + $0x70] sm:$0xff]   ;;  %v2397_v13 = vld [vmem:[#allocation6 + $0xb8] sm:$0xff]  }
  0xb4   : > { %v288_v19 = vshll.u32 %v280_v15, 16  ;;  %v315_v20 = vrot.slane %v280_v15, 1  ;;  %v287_v24 = vor.u32 %v286_v12, %v282_v18  ;;  %v2395_v12 = vld [vmem:[#allocation6 + $0xf8] sm:$0xff]   ;;  %v2399_v14 = vld [vmem:[#allocation6 + $0xf0] sm:$0xff]   ;;  %v2403_v18 = vld [vmem:[#allocation6 + $0xe8] sm:$0xff]  }
  0xb5   : > { %v302_v22 = vrot.slane %v300_v16, 1  ;;  %v319_v40 = vsel %vm313_vm1, %v317_v38, %v318_v39  ;;  %v2394_v15 = vld [vmem:[#allocation6 + $0x30] sm:$0xff]   ;;  %v2396_v16 = vld [vmem:[#allocation6 + $0x68] sm:$0xff]   ;;  %v2423_v38 = vld [vmem:[#allocation6 + $0xc0] sm:$0xff]  }
  0xb6   : > { %v290_v0 = vrot.slane %v288_v19, 1  ;;  %v316_v23 = vsel %vm313_vm1, %v314_v21, %v315_v20  ;;  %v2398_v19 = vld [vmem:[#allocation6 + $0x28] sm:$0xff]   ;;  %v2400_v20 = vld [vmem:[#allocation6 + $0x60] sm:$0xff]  }
  0xb7   : > { %846 = vmatprep.mubr.bf16.mxu1 %v316_v23  ;;  %v303_v25 = vsel %vm281_vm2, %v298_v17, %v302_v22  ;;  %v2401_v17 = vld [vmem:[#allocation6 + $0xb0] sm:$0xff]   ;;  %v2405_v21 = vld [vmem:[#allocation6 + $0xa8] sm:$0xff]   ;;  %v2407_v22 = vld [vmem:[#allocation6 + $0xe0] sm:$0xff]  }
  0xb8   : > { %306 = vrot.lane.b32.xlu1 %v303_v25, %s2593_s12  ;;  %v291_v1 = vsel %vm281_vm2, %v287_v24, %v290_v0  ;;  %v2402_v0 = vld [vmem:[#allocation6 + $0x20] sm:$0xff]   ;;  %v2404_v23 = vld [vmem:[#allocation6 + $0x58] sm:$0xff]  }
  0xb9   : > { %304 = vrot.lane.b32.xlu0 %v291_v1, %s2593_s12  ;;  %v2409_v24 = vld [vmem:[#allocation6 + $0xa0] sm:$0xff]   ;;  %v2411_v25 = vld [vmem:[#allocation6 + $0xd8] sm:$0xff]  }
  0xba   : > { %v2406_v1 = vld [vmem:[#allocation6 + $0x18] sm:$0xff]  }
 0x12a   : > { %v307_v26 = vpop.permute.xlu1 %306 }
 0x12b   : > { %v305_v27 = vpop.permute.xlu0 %304 }
 0x12c   : > { %v322_v29 = vsel %vm273_vm0, %v270_v6, %v305_v27  ;;  %v309_v30 = vsel %vm273_vm0, %v305_v27, %v307_v26  ;;  %v2408_v26 = vld [vmem:[#allocation6 + $0x50] sm:$0xff]   ;;  %v2413_v27 = vld [vmem:[#allocation6 + $0x98] sm:$0xff]  }
 0x12d   : > { %803 = vmatprep.mubr.bf16.mxu0 %v322_v29  ;;  %847 = vmatmul.mubr.bf16.vlgmr.msra.gmra.mxu1 %v309_v30  ;;  %v2410_v29 = vld [vmem:[#allocation6 + $0x10] sm:$0xff]   ;;  %v2412_v30 = vld [vmem:[#allocation6 + $0x48] sm:$0xff]  }
 0x12e   : > { %804 = vmatmul.mubr.bf16.vlgmr.msra.gmra.mxu0 %v276_v7  ;;  %2091 = vmatpush3.bf16.msra.mxu1 %v2392_v10 }
 0x12f   : > { %866 = vmatpush1.bf16.msra.mxu0 %v2379_v28  ;;  %889 = vmatprep.mubr.bf16.mxu0 %v2594_v33  ;;  %v2415_v28 = vld [vmem:[#allocation6 + $0xd0] sm:$0xff]   ;;  %v2416_v33 = vld [vmem:[#allocation6 + $0x40] sm:$0xff]  }
 0x130   : > { %867 = vmatprep.subr.bf16.mxu0 %v2384_v31  ;;  %2092 = vmatprep.subr.bf16.mxu1 %v2393_v11  ;;  %v2417_v31 = vld [vmem:[#allocation6 + $0x90] sm:$0xff]  }
 0x131   : > { %v2426_v11 = vld [vmem:[#allocation6 + $0x130] sm:$0xff]  }
 0x132   : > { %2093 = vmatpush3.bf16.msra.mxu1 %v2394_v15 }
 0x133   : > { %868 = vmatpush1.bf16.msra.mxu0 %v2382_v32  ;;  %2094 = vmatprep.subr.bf16.mxu1 %v2396_v16  ;;  %v2414_v32 = vld [vmem:[#allocation6 + $0x8] sm:$0xff]  }
 0x134   : > { %869 = vmatprep.subr.bf16.mxu0 %v2387_v34  ;;  %v2418_v34 = vld [vmem:[#allocation6] sm:$0xff]  }
 0x136   : > { %2095 = vmatpush3.bf16.msra.mxu1 %v2398_v19 }
 0x137   : > { %870 = vmatpush1.bf16.msra.mxu0 %v2385_v35  ;;  %2096 = vmatprep.subr.bf16.mxu1 %v2400_v20  ;;  %v2419_v35 = vld [vmem:[#allocation6 + $0xc8] sm:$0xff]   ;;  %v2432_v20 = vld [vmem:[#allocation6 + $0x160] sm:$0xff]  }
 0x138   : > { %871 = vmatprep.subr.bf16.mxu0 %v2390_v36  ;;  %v2420_v36 = vld [vmem:[#allocation6 + $0x88] sm:$0xff]  }
 0x13a   : > { %2097 = vmatpush3.bf16.msra.mxu1 %v2402_v0  ;;  %v2433_v0 = vld [vmem:[#allocation6 + $0x1b0] sm:$0xff]  }
 0x13b   : > { %872 = vmatpush1.bf16.msra.mxu0 %v2388_v37  ;;  %2098 = vmatprep.subr.bf16.mxu1 %v2404_v23  ;;  %v2421_v37 = vld [vmem:[#allocation6 + $0x178] sm:$0xff]  }
 0x13c   : > { %2112 = vmatprep.subr.bf16.mxu0 %v2395_v12  ;;  %v2428_v12 = vld [vmem:[#allocation6 + $0x168] sm:$0xff]  }
 0x13e   : > { %2001 = vmatmul.mubr.msk.bf16.vlgmr.msra.gmra.mxu0 %vm273_vm0, %v319_v40  ;;  %2099 = vmatpush3.bf16.msra.mxu1 %v2406_v1  ;;  %v2424_v40 = vld [vmem:[#allocation6 + $0x80] sm:$0xff]  }
 0x13f   : > { %2113 = vmatpush3.bf16.msra.mxu0 %v2397_v13  ;;  %2100 = vmatprep.subr.bf16.mxu1 %v2408_v26  ;;  %v2434_v26 = vld [vmem:[#allocation6 + $0x120] sm:$0xff]  }
 0x140   : > { %2114 = vmatprep.subr.bf16.mxu0 %v2399_v14  ;;  %v2429_v14 = vld [vmem:[#allocation6 + $0x1b8] sm:$0xff]  }
 0x142   : > { %2101 = vmatpush3.bf16.msra.mxu1 %v2410_v29 }
 0x143   : > { %2115 = vmatpush3.bf16.msra.mxu0 %v2401_v17  ;;  %2102 = vmatprep.subr.bf16.mxu1 %v2412_v30  ;;  %v2430_v17 = vld [vmem:[#allocation6 + $0x128] sm:$0xff]  }
 0x144   : > { %2116 = vmatprep.subr.bf16.mxu0 %v2403_v18  ;;  %v2431_v18 = vld [vmem:[#allocation6 + $0x1f0] sm:$0xff]  }
 0x146   : > { %2103 = vmatpush3.bf16.msra.mxu1 %v2414_v32 }
 0x147   : > { %2117 = vmatpush3.bf16.msra.mxu0 %v2405_v21  ;;  %2104 = vmatprep.subr.bf16.mxu1 %v2416_v33  ;;  %v2436_v33 = vld [vmem:[#allocation6 + $0x158] sm:$0xff]  }
 0x148   : > { %2118 = vmatprep.subr.bf16.mxu0 %v2407_v22 }
 0x14a   : > { %2105 = vmatpush3.bf16.msra.mxu1 %v2418_v34  ;;  %v2437_v34 = vld [vmem:[#allocation6 + $0x1a8] sm:$0xff]  }
 0x14b   : > { %2119 = vmatpush3.bf16.msra.mxu0 %v2409_v24  ;;  %2134 = vmatprep.subr.bf16.mxu1 %v2421_v37  ;;  %v2438_v37 = vld [vmem:[#allocation6 + $0x118] sm:$0xff]  }
 0x14c   : > { %2120 = vmatprep.subr.bf16.mxu0 %v2411_v25 }
 0x14f   : > { %2121 = vmatpush3.bf16.msra.mxu0 %v2413_v27  ;;  %v2435_v27 = vld [vmem:[#allocation6 + $0x1e8] sm:$0xff]  }
 0x150   : > { %2122 = vmatprep.subr.bf16.mxu0 %v2415_v28 }
 0x153   : > { %2123 = vmatpush3.bf16.msra.mxu0 %v2417_v31 }
 0x154   : > { %2124 = vmatprep.subr.bf16.mxu0 %v2419_v35 }
 0x157   : > { %2125 = vmatpush3.bf16.msra.mxu0 %v2420_v36 }
 0x158   : > { %2126 = vmatprep.subr.bf16.mxu0 %v2423_v38  ;;  %v2439_v38 = vld [vmem:[#allocation6 + $0x1e0] sm:$0xff]  }
 0x15b   : > { %2127 = vmatpush3.bf16.msra.mxu0 %v2424_v40  ;;  %v2441_v40 = vld [vmem:[#allocation6 + $0x1a0] sm:$0xff]  }
 0x1ed   : > { %v848_v46 = vpop.f32.mrf.mxu1 }
 0x1ee   : > { %v805_v47 = vpop.f32.mrf.mxu0 }
 0x1ef   : > { %v850_v50 = vpop.f32.mrf.mxu1  ;;  %v806_v57 = vadd.f32 %v805_v47, %v401_v56 }
 0x1f0   : > { %v807_v48 = vpop.f32.mrf.mxu0 }
 0x1f1   : > { %v808_v49 = vadd.f32 %v807_v48, %v405_v45  ;;  %v849_v60 = vadd.f32 %v848_v46, %v806_v57  ;;  %v852_v61 = vpop.f32.mrf.mxu1  ;;  %v2427_v46 = vld [vmem:[#allocation6 + $0x1f8] sm:$0xff]  }
 0x1f2   : > { %v809_v51 = vpop.f32.mrf.mxu0  ;;  %2156 = vmatprep.subr.bf16.mxu0 %v2427_v46  ;;  %v2446_v46 = vld [vmem:[#allocation6 + $0x108] sm:$0xff]  }
 0x1f3   : > { %v851_v53 = vadd.f32 %v850_v50, %v808_v49  ;;  %v810_v58 = vadd.f32 %v809_v51, %v401_v56 }
 0x1f4   : > { %v811_v54 = vpop.f32.mrf.mxu0 }
 0x1f5   : > { %v2751_v55 = vadd.f32 %v811_v54, %v405_v45  ;;  %v853_v3 = vadd.f32 %v852_v61, %v810_v58 }
 0x1fe   : > { %v891_v59 = vpop.f32.mrf.mxu0 }
 0x1ff   : > { %v892_v63 = vadd.f32 %v891_v59, %v849_v60 }
 0x200   : > { %v893_v62 = vpop.f32.mrf.mxu0 }
 0x201   : > { %v2753_v2 = vadd.f32 %v893_v62, %v851_v53  ;;  %v900_v6 = vmax.f32 %v892_v63, 0.0 }
 0x202   : > { %v895_v4 = vpop.f32.mrf.mxu0 }
 0x203   : > { %v896_v5 = vadd.f32 %v895_v4, %v853_v3 }
 0x205   : > { %v901_v7 = vmax.f32 %v896_v5, 0.0 }
 0x207   : > { %v902_v8 = vpack.c.bf16 %v901_v7, %v900_v6  ;;  %v2422_v6 = vld [vmem:[#allocation6 + $0x138] sm:$0xff]  }
 0x209   : > { %906 = vrot.lane.b32.xlu0 %v902_v8, %s2595_s15  ;;  %v2425_v8 = vld [vmem:[#allocation6 + $0x170] sm:$0xff]   ;;  %s2521_s15 = scalar_lea.vmem %s2520_s14, 256 }
 0x20a   : > { %p2523_p0 = scmp.lt.s32.totalorder %s2521_s15, %s2515_s13 }
 0x20c   : > { %p2524_p1 = por %p2523_p0, %p2522_p11 }
 0x20e   : > { %p2525_p3 = pnand %p2524_p1, %p2518_p8 }
 0x27b   : > { %v907_v39 = vpop.permute.xlu0 %906 }
 0x27c   : > { %v911_v41 = vsel %vm908_vm3, 0, %v907_v39  ;;  %v912_v42 = vsel %vm908_vm3, %v907_v39, 0  ;;  %v2440_v39 = vld [vmem:[#allocation6 + $0x150] sm:$0xff]  }
 0x27d   : > { %v913_v43 = vshrl.u32 %v911_v41, 16  ;;  %v919_v44 = vshrl.u32 %v912_v42, 16  ;;  %v916_v48 = vshll.u32 %v911_v41, 16  ;;  %v922_v50 = vshll.u32 %v912_v42, 16  ;;  %v2442_v41 = vld [vmem:[#allocation6 + $0x110] sm:$0xff]   ;;  %v2443_v42 = vld [vmem:[#allocation6 + $0x1d8] sm:$0xff]  }
 0x27f   : > { %v915_v47 = vrot.slane %v913_v43, 7  ;;  %v921_v49 = vrot.slane %v919_v44, 7  ;;  %v2444_v43 = vld [vmem:[#allocation6 + $0x148] sm:$0xff]   ;;  %v2445_v44 = vld [vmem:[#allocation6 + $0x198] sm:$0xff]  }
 0x281   : > { %v918_v51 = vor.u32 %v916_v48, %v915_v47  ;;  %v924_v52 = vor.u32 %v922_v50, %v921_v49  ;;  %v2761_v53 = vsel %vm2755_vm6, %v915_v47, 0  ;;  %v935_v61 = vsel %vm2755_vm6, %v921_v49, 0  ;;  %v2447_v47 = vld [vmem:[#allocation6 + $0x1d0] sm:$0xff]   ;;  %v2448_v48 = vld [vmem:[#allocation6 + $0x140] sm:$0xff]  }
 0x282   : > { %v972_v58 = vshll.u32 %v2761_v53, 16  ;;  %v2449_v50 = vld [vmem:[#allocation6 + $0x190] sm:$0xff]  }
 0x283   : > { %v933_v54 = vsel %vm2755_vm6, 0, %v924_v52  ;;  %v2767_v56 = vsel %vm2755_vm6, 0, %v918_v51  ;;  %v2450_v52 = vld [vmem:[#allocation6 + $0x100] sm:$0xff]  }
 0x284   : > { %942 = vrot.lane.b32.xlu0 %v933_v54, %s2592_s11  ;;  %940 = vrot.lane.b32.xlu1 %v2767_v56, %s2592_s11  ;;  %v967_v57 = vshll.u32 %v2767_v56, 16  ;;  %v965_v59 = vshrl.u32 %v2767_v56, 16  ;;  %v974_v63 = vrot.slane %v972_v58, 1 }
 0x286   : > { %v969_v60 = vrot.slane %v967_v57, 1 }
 0x288   : > { %958 = vrot.lane.b32.xlu0 %v935_v61, %s2596_s16  ;;  %956 = vrot.lane.b32.xlu1 %v2761_v53, %s2596_s16  ;;  %v970_v62 = vor.u32 %v969_v60, %v965_v59  ;;  %v2452_v59 = vld [vmem:[#allocation6 + $0x188] sm:$0xff]  }
 0x28a   : > { %v975_v3 = vsel %vm281_vm2, %v970_v62, %v974_v63  ;;  %v2454_v62 = vld [vmem:[#allocation6 + $0x1c0] sm:$0xff]   ;;  %v2597_v63 = vmov 0.0  }
 0x28b   : > { %1671 = vmatprep.mubr.bf16.mxu0 %v975_v3 }
 0x28c   : > { %954 = vrot.lane.b32.xlu0 %v933_v54, %s2596_s16  ;;  %952 = vrot.lane.b32.xlu1 %v2767_v56, %s2596_s16  ;;  %v2451_v54 = vld [vmem:[#allocation6 + $0x1c8] sm:$0xff]  }
 0x290   : > { %946 = vrot.lane.b32.xlu0 %v935_v61, %s2592_s11  ;;  %944 = vrot.lane.b32.xlu1 %v2761_v53, %s2592_s11  ;;  %v2453_v61 = vld [vmem:[#allocation6 + $0x238] sm:$0xff]   ;;  %s2823_s11 = scalar_lea.sflag [#allocation5], %s245_s25 }
 0x2f6   : > { %v943_v4 = vpop.permute.xlu0 %942  ;;  %v941_v5 = vpop.permute.xlu1 %940 }
 0x2f7   : > { %v2784_v7 = vsel %vm948_vm7, %v941_v5, %v943_v4  ;;  %v2455_v4 = vld [vmem:[#allocation6 + $0x180] sm:$0xff]   ;;  %v2456_v5 = vld [vmem:[#allocation6 + $0x230] sm:$0xff]  }
 0x2f8   : > { %1630 = vmatprep.mubr.bf16.mxu1 %v2784_v7  ;;  %v1006_v29 = vrot.slane %v2784_v7, 1  ;;  %v979_v45 = vshll.u32 %v2784_v7, 16  ;;  %v977_v57 = vshrl.u32 %v2784_v7, 16  ;;  %v1004_v7 = vrot.slane %v2761_v53, 1  ;;  %v2462_v53 = vld [vmem:[#allocation6 + $0x200] sm:$0xff]  }
 0x2f9   : > { %1631 = vmatmul.mubr.bf16.vlgmr.msra.gmra.mxu1 %v2767_v56 }
 0x2fa   : > { %2135 = vmatpush3.bf16.msra.mxu1 %v2422_v6  ;;  %v959_v9 = vpop.permute.xlu0 %958  ;;  %v957_v10 = vpop.permute.xlu1 %956  ;;  %v981_v51 = vrot.slane %v979_v45, 1  ;;  %v1003_v6 = vrot.slane %v2767_v56, 1  ;;  %v2461_v56 = vld [vmem:[#allocation6 + $0x208] sm:$0xff]  }
 0x2fb   : > { %2136 = vmatprep.subr.bf16.mxu1 %v2425_v8  ;;  %v2788_v13 = vsel %vm960_vm8, %v957_v10, %v959_v9  ;;  %v2457_v8 = vld [vmem:[#allocation6 + $0x228] sm:$0xff]   ;;  %v2458_v10 = vld [vmem:[#allocation6 + $0x220] sm:$0xff]  }
 0x2fc   : > { %v996_v21 = vshll.u32 %v2788_v13, 16  ;;  %v982_v60 = vor.u32 %v981_v51, %v977_v57  ;;  %v1005_v9 = vsel %vm313_vm1, %v1003_v6, %v1004_v7 }
 0x2fe   : > { %2137 = vmatpush3.bf16.msra.mxu1 %v2426_v11  ;;  %v955_v15 = vpop.permute.xlu0 %954  ;;  %v953_v16 = vpop.permute.xlu1 %952  ;;  %v998_v30 = vrot.slane %v996_v21, 1  ;;  %v2459_v11 = vld [vmem:[#allocation6 + $0x218] sm:$0xff]  }
 0x2ff   : > { %v2790_v19 = vsel %vm960_vm8, %v953_v16, %v955_v15  ;;  %2138 = vmatprep.subr.bf16.mxu1 %v2428_v12  ;;  %v2460_v12 = vld [vmem:[#allocation6 + $0x210] sm:$0xff]   ;;  %v1010_v15 = vrot.slane %v2788_v13, 1  ;;  %v2002_v13 = vld [vmem:[%s2869_s4] ss:$0 sm:$0xff] }
 0x300   : > { %v991_v22 = vshll.u32 %v2790_v19, 16  ;;  %1672 = vmatmul.mubr.bf16.vlgmr.msra.gmra.mxu0 %v2790_v19  ;;  %v989_v23 = vshrl.u32 %v2790_v19, 16 }
 0x301   : > { %2157 = vmatpush3.bf16.msra.mxu0 %v2429_v14  ;;  %v1009_v14 = vrot.slane %v2790_v19, 1 }
 0x302   : > { %v993_v24 = vrot.slane %v991_v22, 1  ;;  %2139 = vmatpush3.bf16.msra.mxu1 %v2430_v17  ;;  %v947_v25 = vpop.permute.xlu0 %946  ;;  %v945_v1 = vpop.permute.xlu1 %944  ;;  %2158 = vmatprep.subr.bf16.mxu0 %v2431_v18 }
 0x303   : > { %v950_v28 = vsel %vm948_vm7, %v945_v1, %v947_v25  ;;  %2140 = vmatprep.subr.bf16.mxu1 %v2432_v20  ;;  %v1011_v16 = vsel %vm313_vm1, %v1009_v14, %v1010_v15  ;;  %v854_v17 = vpop.f32.mrf.mxu1  ;;  %v897_v18 = vpop.f32.mrf.mxu0 }
 0x304   : > { %v1007_v31 = vrot.slane %v950_v28, 1  ;;  %v994_v32 = vor.u32 %v993_v24, %v989_v23  ;;  %v984_v49 = vshll.u32 %v950_v28, 16  ;;  %v855_v51 = vadd.f32 %v854_v17, %v2751_v55 }
 0x305   : > { %2159 = vmatpush3.bf16.msra.mxu0 %v2433_v0 }
 0x306   : > { %2141 = vmatpush3.bf16.msra.mxu1 %v2434_v26  ;;  %v999_v35 = vsel %vm281_vm2, %v994_v32, %v998_v30  ;;  %2160 = vmatprep.subr.bf16.mxu0 %v2435_v27  ;;  %v1008_v36 = vsel %vm313_vm1, %v1006_v29, %v1007_v31  ;;  %v986_v58 = vrot.slane %v984_v49, 1  ;;  %v898_v57 = vadd.f32 %v897_v18, %v855_v51 }
 0x307   : > { %1712 = vmatprep.mubr.bf16.mxu1 %v999_v35  ;;  %1753 = vmatprep.mubr.bf16.mxu0 %v1008_v36 }
 0x308   : > { %2142 = vmatprep.subr.bf16.mxu1 %v2436_v33  ;;  %v987_v3 = vsel %vm281_vm2, %v982_v60, %v986_v58 }
 0x309   : > { %2161 = vmatpush3.bf16.msra.mxu0 %v2437_v34 }
 0x30a   : > { %2143 = vmatpush3.bf16.msra.mxu1 %v2438_v37  ;;  %2162 = vmatprep.subr.bf16.mxu0 %v2439_v38 }
 0x30b   : > { %2144 = vmatprep.subr.bf16.mxu1 %v2440_v39 }
 0x30d   : > { %2163 = vmatpush3.bf16.msra.mxu0 %v2441_v40 }
 0x30e   : > { %2145 = vmatpush3.bf16.msra.mxu1 %v2442_v41  ;;  %2164 = vmatprep.subr.bf16.mxu0 %v2443_v42 }
 0x30f   : > { %2146 = vmatprep.subr.bf16.mxu1 %v2444_v43 }
 0x311   : > { %2165 = vmatpush3.bf16.msra.mxu0 %v2445_v44 }
 0x312   : > { %2147 = vmatpush3.bf16.msra.mxu1 %v2446_v46  ;;  %2166 = vmatprep.subr.bf16.mxu0 %v2447_v47 }
 0x313   : > { %2148 = vmatprep.subr.bf16.mxu1 %v2448_v48 }
 0x315   : > { %2167 = vmatpush3.bf16.msra.mxu0 %v2449_v50 }
 0x316   : > { %2149 = vmatpush3.bf16.msra.mxu1 %v2450_v52  ;;  %2168 = vmatprep.subr.bf16.mxu0 %v2451_v54 }
 0x317   : > { %2187 = vmatprep.subr.bf16.mxu1 %v2597_v63 }
 0x319   : > { %1713 = vmatmul.mubr.bf16.vlgmr.msra.gmra.mxu1 %v987_v3  ;;  %2169 = vmatpush3.bf16.msra.mxu0 %v2452_v59 }
 0x31a   : > { %2188 = vmatpush3.bf16.msra.mxu1 %v2453_v61  ;;  %2170 = vmatprep.subr.bf16.mxu0 %v2454_v62 }
 0x31b   : > { %2189 = vmatprep.subr.bf16.mxu1 %v2597_v63  ;;  %2203 = vmatprep.mubr.msk.bf16.mxu1 %vm2598_vm9, %v2597_v63 }
 0x31d   : > { %2171 = vmatpush3.bf16.msra.mxu0 %v2455_v4 }
 0x31e   : > { %2190 = vmatpush3.bf16.msra.mxu1 %v2456_v5 }
 0x31f   : > { %2191 = vmatprep.subr.bf16.mxu1 %v2597_v63 }
 0x320   : > { %1754 = vmatmul.mubr.bf16.vlgmr.msra.gmra.mxu0 %v1005_v9 }
 0x322   : > { %2192 = vmatpush3.bf16.msra.mxu1 %v2457_v8 }
 0x323   : > { %2193 = vmatprep.subr.bf16.mxu1 %v2597_v63 }
 0x326   : > { %2194 = vmatpush3.bf16.msra.mxu1 %v2458_v10 }
 0x327   : > { %2195 = vmatprep.subr.bf16.mxu1 %v2597_v63 }
 0x32a   : > { %2196 = vmatpush3.bf16.msra.mxu1 %v2459_v11 }
 0x32b   : > { %2197 = vmatprep.subr.bf16.mxu1 %v2597_v63 }
 0x32e   : > { %2198 = vmatpush3.bf16.msra.mxu1 %v2460_v12 }
 0x32f   : > { %2199 = vmatprep.subr.bf16.mxu1 %v2597_v63 }
 0x332   : > { %2200 = vmatpush3.bf16.msra.mxu1 %v2461_v56 }
 0x333   : > { %2201 = vmatprep.subr.bf16.mxu1 %v2597_v63 }
 0x336   : > { %2202 = vmatpush3.bf16.msra.mxu1 %v2462_v53 }
 0x339   : > { %2204 = vmatmul.mubr.bf16.vlgmr.msra.gmra.mxu1 %v1011_v16 }
 0x3b9   : > { %v2106_v20 = vpop.f32.mrf.mxu1 }
 0x3bb   : > { %v2107_v22 = vpop.f32.mrf.mxu1 }
 0x3bc   : > { %v2108_v29 = vadd.f32 %v2107_v22, %v2106_v20 }
 0x3bd   : > { %v2109_v23 = vpop.f32.mrf.mxu1 }
 0x3be   : > { %v1633_v33 = vadd.f32 %v2108_v29, %v2002_v13 }
 0x3bf   : > { %v2110_v25 = vpop.f32.mrf.mxu1 }
 0x3c0   : > { %v2128_v21 = vpop.f32.mrf.mxu0  ;;  %v2111_v34 = vadd.f32 %v2110_v25, %v2109_v23 }
 0x3c2   : > { %v2129_v0 = vpop.f32.mrf.mxu0  ;;  %v1636_v41 = vadd.f32 %v2111_v34, %v2002_v13 }
 0x3c3   : > { %v2130_v31 = vadd.f32 %v2129_v0, %v2128_v21 }
 0x3c4   : > { %v2131_v24 = vpop.f32.mrf.mxu0 }
 0x3c5   : > { %v1674_v37 = vadd.f32 %v2130_v31, %v1633_v33 }
 0x3c6   : > { %v2132_v1 = vpop.f32.mrf.mxu0 }
 0x3c7   : > { %v2133_v38 = vadd.f32 %v2132_v1, %v2131_v24 }
 0x3c9   : > { %v1677_v44 = vadd.f32 %v2133_v38, %v1636_v41 }
 0x3d9   : > { %v2150_v26 = vpop.f32.mrf.mxu1 }
 0x3db   : > { %v2151_v28 = vpop.f32.mrf.mxu1 }
 0x3dc   : > { %v2152_v35 = vadd.f32 %v2151_v28, %v2150_v26 }
 0x3dd   : > { %v2153_v30 = vpop.f32.mrf.mxu1 }
 0x3de   : > { %v1715_v42 = vadd.f32 %v2152_v35, %v1674_v37 }
 0x3df   : > { %v2154_v36 = vpop.f32.mrf.mxu1 }
 0x3e0   : > { %v2172_v27 = vpop.f32.mrf.mxu0  ;;  %v2155_v43 = vadd.f32 %v2154_v36, %v2153_v30 }
 0x3e2   : > { %v2173_v19 = vpop.f32.mrf.mxu0  ;;  %v1718_v48 = vadd.f32 %v2155_v43, %v1677_v44 }
 0x3e3   : > { %v2174_v39 = vadd.f32 %v2173_v19, %v2172_v27 }
 0x3e4   : > { %v2175_v32 = vpop.f32.mrf.mxu0 }
 0x3e5   : > { %v1756_v46 = vadd.f32 %v2174_v39, %v1715_v42 }
 0x3e6   : > { %v2176_v40 = vpop.f32.mrf.mxu0 }
 0x3e7   : > { %v2177_v45 = vadd.f32 %v2176_v40, %v2175_v32 }
 0x3e9   : > { %v1759_v52 = vadd.f32 %v2177_v45, %v1718_v48 }
 0x3f9   : > { %v1796_v47 = vpop.f32.mrf.mxu1 }
 0x3fa   : > { %v1797_v49 = vadd.f32 %v1796_v47, %v1756_v46 }
 0x3fb   : > { %v2205_v50 = vpop.f32.mrf.mxu1 }
 0x3fc   : > { %v1805_v58 = vadd.f32 %v1797_v49, %v2753_v2 }
 0x3fd   : > { %v1799_v54 = vpop.f32.mrf.mxu1 }
 0x3fe   : > { %v1800_v59 = vadd.f32 %v1799_v54, %v1759_v52  ;;  %v1807_v62 = vmax.f32 %v1805_v58, 0.0 }
 0x3ff   : > { %v2206_v60 = vpop.f32.mrf.mxu1 }
 0x400   : > { %v1806_v61 = vadd.f32 %v1800_v59, %v898_v57 }
 0x402   : > { %v1808_v63 = vmax.f32 %v1806_v61, 0.0 }
 0x404   : > { %v2088_v55 = vpack.c.bf16 %v1808_v63, %v1807_v62 }
 0x406   : > { %2089 = vst [vmem:[%s247_s7] sm:$0xff] %v2088_v55  }
 0x407   : > { %2528 = shalt.err (!%p2525_p3)
}
 0x408   : > { %s2529_s16 = scalar_lea.hbm %s2819_s10, 128  ;;  %s2533_s25 = scalar_lea.hbm %s2870_s5, 256 }
 0x409   : > { %p2530_p2 = scmp.ne.s32.totalorder %s2819_s10, %s2529_s16  ;;  %p2534_p6 = scmp.lt.s32.totalorder %s2819_s10, %s2870_s5 }
 0x40a   : > { %p2535_p9 = scmp.lt.s32.totalorder %s2533_s25, %s2529_s16 }
 0x40b   : > { %p2531_p4 = pnand %p2530_p2, %p2669_p5 }
 0x40c   : > { %p2536_p7 = por %p2535_p9, %p2534_p6 }
 0x40d   : > { %p2532_p13 = pneg %p2531_p4 }
 0x40f   : > { %p2537_p10 = pnand %p2536_p7, %p2532_p13 }
 0x411   : > { %2540 = shalt.err (!%p2537_p10)
}
 0x412   : > { %s2600_s7 = smov 4  }
 0x413   : > { %2216 = dma.vmem_to_hbm [thread:$0]  (%p2669_p5), %s2821_s8, 128, %s2819_s10, %s2823_s11, %s2593_s12, %s2593_s12, %s2600_s7  }
 0x414 PF: > { %p2233_p12 = scmp.ge.s32.totalorder %s2583_s21, 2  ;;  %s1848_s30 = sand.u32 1, %s2571_s18  }
 0x415   : > { %p2882_p8 = scmp.ne.s32.totalorder %s2873_s29, 0  ;;  %s1849_s9 = scalar_lea.sflag [#allocation5], %s1848_s30 }
 0x417   : > { %p2226_p11 = pnand %p2233_p12, %p2882_p8 }
 0x419   : > { %p2227_p0 = pneg %p2226_p11 }
 0x41b   : > { %2566 = dma.done.wait (%p2227_p0), %s1849_s9, 128  }
 0x41c   : > { %2568 = vsyncadd (%p2227_p0), %s1849_s9, 4294967168  ;;  %p17_p1 = scmp.ge.s32.totalorder %s2656_s24, 4   ;;  %s2883_s18 = smov %s2575_s19 }
 0x41d   : > { %s2884_s19 = smov %s2579_s20  ;;  %s2885_s20 = smov %s2667_s27 }
 0x41e   : > { %s2886_s21 = smov %s2656_s24  ;;  %19 = sbr.rel (!%p17_p1) target bundleno = 5 (0x5), region = 84 }
 0x423   :  { %1854 = vsyncpa [#allocation4], 1 }
 0x424   :  { %1856 = vsyncpa [#allocation4 + $0x1], 1 }
 0x425   :  { %1857 = vsyncpa [#allocation7], 1 }
 0x426   :  { %1858 = vsyncpa [#allocation5], 1 }
 0x427   :  { %1860 = vsyncpa [#allocation5 + $0x1], 1 }

</bundles_post_ra>
